<compile_context>
chip_gen: v5e
topology: v5e:2x2
jax: 0.10.0
libtpu: 0.0.40
codegen_flags: <defaults>
</compile_context>

<pallas_src>
import math

import jax
import jax.numpy as jnp
from jax.experimental import pallas as pl
from jax.experimental.pallas import tpu as pltpu

_LOG_SQRT_2PI = math.log(math.sqrt(2.0 * math.pi))


def actor_kernel(xt_ref, w1t_ref, b1_ref, wh_ref, bh_ref, eps_ref, out_ref):
    # fc_state on the MXU: (128, 8) @ (8, Bt) -> (128, Bt); lane-dense over batch.
    h = jnp.dot(w1t_ref[...], xt_ref[...], preferred_element_type=jnp.float32)
    h = jnp.maximum(h + b1_ref[...], 0.0)

    # Fused mu / std heads on the MXU: (8, 128) @ (128, Bt) -> (8, Bt).
    # Row 0 = mu, row 1 = pre-softplus std; rows 2..7 are zero padding.
    mz = jnp.dot(wh_ref[...], h, preferred_element_type=jnp.float32) + bh_ref[...]
    mu = mz[0:1, :]                      # (1, Bt)
    z = mz[1:2, :]                       # (1, Bt)

    # Softplus (torch default beta=1, threshold=20).
    std = jnp.where(z > 20.0, z, jnp.log1p(jnp.exp(jnp.minimum(z, 20.0))))

    # dist.rsample(): mu + std * eps, eps ~ N(0, 1)  (lane-dense noise input).
    eps = eps_ref[...]                   # (1, Bt)
    sample = mu + std * eps
    action = jnp.tanh(sample)

    # Normal.log_prob(sample); (sample - mu)^2 / (2 std^2) == 0.5 eps^2 exactly.
    log_prob = -0.5 * eps * eps - jnp.log(std) - _LOG_SQRT_2PI

    # entropy = -(log_prob - log(1 - tanh(action)^2 + 1e-7))
    # (double tanh intentionally mirrors the PyTorch reference)
    entropy = -(log_prob - jnp.log(1.0 - jnp.tanh(action) ** 2 + 1e-7))

    # Lane-dense output: row 0 = action*2, row 1 = entropy (full-lane stores).
    out_ref[0:1, :] = action * 2.0
    out_ref[1:2, :] = entropy


def pack_params(params):
    """One-time repack of PyTorch-layout params into the kernel layout.

    Call this ONCE (outside the per-step path), not on every forward call.
    """
    w1, b1, wmu, bmu, wstd, bstd = params
    w1t = jnp.zeros((128, 8), jnp.float32).at[:, :3].set(w1.T)   # K padded 3 -> 8
    b1c = b1.reshape(128, 1)
    wh = jnp.zeros((8, 128), jnp.float32)
    wh = wh.at[0, :].set(wmu[:, 0]).at[1, :].set(wstd[:, 0])     # rows 2..7 zero
    bh = jnp.zeros((8, 1), jnp.float32)
    bh = bh.at[0, 0].set(bmu[0, 0]).at[1, 0].set(bstd[0, 0])
    return (w1t, b1c, wh, bh)


def model_action_forward(state, kparams, eps, *, block_rows=256):
    """state: (B, 3) f32, eps: (B, 1) f32 N(0,1) noise. Returns (action*2, entropy), each (B, 1)."""
    w1t, b1c, wh, bh = kparams
    B = state.shape[0]
    Bt = int(block_rows)
    assert Bt % 128 == 0, "batch block must be a multiple of 128 (lane-dense output)"
    Bp = ((B + Bt - 1) // Bt) * Bt
    nblk = Bp // Bt

    # Lane-dense, padded inputs: state^T with K padded to 8, eps as (1, Bp).
    xt = jnp.zeros((8, Bp), jnp.float32).at[:3, :B].set(state.T)
    epst = jnp.zeros((1, Bp), jnp.float32).at[:, :B].set(eps.reshape(1, B))

    out = pl.pallas_call(
        actor_kernel,
        out_shape=jax.ShapeDtypeStruct((2, Bp), jnp.float32),
        grid=(nblk,),
        in_specs=[
            pl.BlockSpec((8, Bt), lambda i: (0, i)),      # state^T block
            pl.BlockSpec((128, 8), lambda i: (0, 0)),     # W1^T (full)
            pl.BlockSpec((128, 1), lambda i: (0, 0)),     # b1 (full)
            pl.BlockSpec((8, 128), lambda i: (0, 0)),     # [w_mu; w_std] (full)
            pl.BlockSpec((8, 1), lambda i: (0, 0)),       # [b_mu; b_std] (full)
            pl.BlockSpec((1, Bt), lambda i: (0, i)),      # eps block (lane-dense)
        ],
        out_specs=pl.BlockSpec((2, Bt), lambda i: (0, i)),
        compiler_params=pltpu.CompilerParams(
            dimension_semantics=("parallel",)),
    )(xt, w1t, b1c, wh, bh, epst)

    action = out[0, :B].reshape(B, 1)
    entropy = out[1, :B].reshape(B, 1)
    return action, entropy


def init_params(key):
    """Deterministic init mimicking PyTorch Linear defaults (U(-1/sqrt(fan_in), +))."""
    ks = jax.random.split(key, 6)

    def lin(kw, kb, fan_in, fan_out):
        bound = 1.0 / math.sqrt(fan_in)
        w = jax.random.uniform(kw, (fan_in, fan_out), jnp.float32, -bound, bound)
        b = jax.random.uniform(kb, (1, fan_out), jnp.float32, -bound, bound)
        return w, b

    w1, b1 = lin(ks[0], ks[1], 3, 128)
    wmu, bmu = lin(ks[2], ks[3], 128, 1)
    wstd, bstd = lin(ks[4], ks[5], 128, 1)
    return (w1, b1, wmu, bmu, wstd, bstd)


def reference_forward(state, params, eps):
    """Pure-JAX reference mirroring the PyTorch module exactly (full f32 matmuls)."""
    w1, b1, wmu, bmu, wstd, bstd = params
    hi = jax.lax.Precision.HIGHEST
    h = jnp.maximum(jnp.dot(state, w1, precision=hi) + b1, 0.0)
    mu = jnp.dot(h, wmu, precision=hi) + bmu
    z = jnp.dot(h, wstd, precision=hi) + bstd
    std = jnp.where(z > 20.0, z, jnp.log1p(jnp.exp(jnp.minimum(z, 20.0))))
    sample = mu + std * eps
    action = jnp.tanh(sample)
    log_prob = (-((sample - mu) ** 2) / (2.0 * std * std)
                - jnp.log(std) - _LOG_SQRT_2PI)
    entropy = -(log_prob - jnp.log(1.0 - jnp.tanh(action) ** 2 + 1e-7))
    return action * 2.0, entropy


if __name__ == "__main__":
    key = jax.random.PRNGKey(0)
    k_params, k_state, k_eps = jax.random.split(key, 3)

    params = init_params(k_params)
    kparams = pack_params(params)          # one-time packing, outside the step

    # Small, module-consistent shapes (single grid block).
    B = 8
    state = jax.random.normal(k_state, (B, 3), jnp.float32)
    eps = jax.random.normal(k_eps, (B, 1), jnp.float32)   # rsample() noise

    action, entropy = model_action_forward(state, kparams, eps)
    jax.block_until_ready((action, entropy))

    ref_action, ref_entropy = reference_forward(state, params, eps)
    assert action.shape == (B, 1) and entropy.shape == (B, 1)
    assert jnp.allclose(action, ref_action, atol=1e-4, rtol=1e-4)
    assert jnp.allclose(entropy, ref_entropy, atol=1e-3, rtol=1e-3)

    # Also exercise the multi-block (padded) grid path.
    B2 = 300
    k_state2, k_eps2 = jax.random.split(k_eps)
    state2 = jax.random.normal(k_state2, (B2, 3), jnp.float32)
    eps2 = jax.random.normal(k_eps2, (B2, 1), jnp.float32)
    a2, e2 = model_action_forward(state2, kparams, eps2, block_rows=128)
    jax.block_until_ready((a2, e2))
    ra2, re2 = reference_forward(state2, params, eps2)
    assert jnp.allclose(a2, ra2, atol=1e-4, rtol=1e-4)
    assert jnp.allclose(e2, re2, atol=1e-3, rtol=1e-3)

    print("KERNEL_OK")
</pallas_src>

<mosaic_0001>
module attributes {stable_mosaic.version = 11 : i64} {
  func.func @actor_kernel(%arg0: i32, %arg1: memref<8x256xf32, #tpu.memory_space<vmem>>, %arg2: memref<128x8xf32, #tpu.memory_space<vmem>>, %arg3: memref<128x1xf32, #tpu.memory_space<vmem>>, %arg4: memref<8x128xf32, #tpu.memory_space<vmem>>, %arg5: memref<8x1xf32, #tpu.memory_space<vmem>>, %arg6: memref<1x256xf32, #tpu.memory_space<vmem>>, %arg7: memref<2x256xf32, #tpu.memory_space<vmem>>) attributes {dimension_semantics = [#tpu.dimension_semantics<parallel>], iteration_bounds = array<i64: 1>, scalar_prefetch = 0 : i64, scratch_operands = 0 : i64, tpu.core_type = #tpu.core_type<tc>, window_params = [{transform_indices = @transform_0, window_bounds = array<i64: 8, 256>}, {pipeline_mode = #tpu.pipeline_mode<synchronous>, transform_indices = @transform_1, window_bounds = array<i64: 128, 8>}, {pipeline_mode = #tpu.pipeline_mode<synchronous>, transform_indices = @transform_2, window_bounds = array<i64: 128, 1>}, {pipeline_mode = #tpu.pipeline_mode<synchronous>, transform_indices = @transform_3, window_bounds = array<i64: 8, 128>}, {pipeline_mode = #tpu.pipeline_mode<synchronous>, transform_indices = @transform_4, window_bounds = array<i64: 8, 1>}, {transform_indices = @transform_5, window_bounds = array<i64: 1, 256>}, {transform_indices = @transform_6, window_bounds = array<i64: 2, 256>}]} {
    %c0 = arith.constant 0 : index
    %c0_0 = arith.constant 0 : index
    %0 = vector.load %arg2[%c0, %c0_0] : memref<128x8xf32, #tpu.memory_space<vmem>>, vector<128x8xf32>
    %c0_1 = arith.constant 0 : index
    %c0_2 = arith.constant 0 : index
    %1 = vector.load %arg1[%c0_1, %c0_2] : memref<8x256xf32, #tpu.memory_space<vmem>>, vector<8x256xf32>
    %cst = arith.constant dense<0.000000e+00> : vector<128x256xf32>
    %2 = tpu.matmul %0, %1, %cst {dimension_numbers = #tpu.dot_dimension_numbers<[1], [0], [0], [1], [0, 0, 1, 1], [], []>} : vector<128x8xf32>, vector<8x256xf32>, vector<128x256xf32> -> vector<128x256xf32>
    %c0_3 = arith.constant 0 : index
    %c0_4 = arith.constant 0 : index
    %3 = vector.load %arg3[%c0_3, %c0_4] : memref<128x1xf32, #tpu.memory_space<vmem>>, vector<128x1xf32>
    %4 = vector.broadcast %3 : vector<128x1xf32> to vector<128x256xf32>
    %5 = arith.addf %2, %4 : vector<128x256xf32>
    %cst_5 = arith.constant 0.000000e+00 : f32
    %6 = vector.broadcast %cst_5 : f32 to vector<128x256xf32>
    %7 = arith.maximumf %5, %6 : vector<128x256xf32>
    %c0_6 = arith.constant 0 : index
    %c0_7 = arith.constant 0 : index
    %8 = vector.load %arg4[%c0_6, %c0_7] : memref<8x128xf32, #tpu.memory_space<vmem>>, vector<8x128xf32>
    %cst_8 = arith.constant dense<0.000000e+00> : vector<8x256xf32>
    %9 = tpu.matmul %8, %7, %cst_8 {dimension_numbers = #tpu.dot_dimension_numbers<[1], [0], [0], [1], [0, 0, 1, 1], [], []>} : vector<8x128xf32>, vector<128x256xf32>, vector<8x256xf32> -> vector<8x256xf32>
    %c0_9 = arith.constant 0 : index
    %c0_10 = arith.constant 0 : index
    %10 = vector.load %arg5[%c0_9, %c0_10] : memref<8x1xf32, #tpu.memory_space<vmem>>, vector<8x1xf32>
    %11 = vector.broadcast %10 : vector<8x1xf32> to vector<8x256xf32>
    %12 = arith.addf %9, %11 : vector<8x256xf32>
    %13 = vector.extract_strided_slice %12 {offsets = [0, 0], sizes = [1, 256], strides = [1, 1]} : vector<8x256xf32> to vector<1x256xf32>
    %14 = vector.extract_strided_slice %12 {offsets = [1, 0], sizes = [1, 256], strides = [1, 1]} : vector<8x256xf32> to vector<1x256xf32>
    %cst_11 = arith.constant 2.000000e+01 : f32
    %15 = vector.broadcast %cst_11 : f32 to vector<1x256xf32>
    %16 = arith.cmpf ogt, %14, %15 : vector<1x256xf32>
    %cst_12 = arith.constant 2.000000e+01 : f32
    %17 = vector.broadcast %cst_12 : f32 to vector<1x256xf32>
    %18 = arith.minimumf %14, %17 : vector<1x256xf32>
    %19 = math.exp %18 : vector<1x256xf32>
    %20 = math.log1p %19 : vector<1x256xf32>
    %21 = arith.select %16, %14, %20 : vector<1x256xi1>, vector<1x256xf32>
    %c0_13 = arith.constant 0 : index
    %c0_14 = arith.constant 0 : index
    %22 = vector.load %arg6[%c0_13, %c0_14] : memref<1x256xf32, #tpu.memory_space<vmem>>, vector<1x256xf32>
    %23 = arith.mulf %21, %22 : vector<1x256xf32>
    %24 = arith.addf %13, %23 : vector<1x256xf32>
    %25 = math.tanh %24 : vector<1x256xf32>
    %cst_15 = arith.constant -5.000000e-01 : f32
    %26 = vector.broadcast %cst_15 : f32 to vector<1x256xf32>
    %27 = arith.mulf %26, %22 : vector<1x256xf32>
    %28 = arith.mulf %27, %22 : vector<1x256xf32>
    %29 = math.log %21 : vector<1x256xf32>
    %30 = arith.subf %28, %29 : vector<1x256xf32>
    %cst_16 = arith.constant 0.918938517 : f32
    %31 = vector.broadcast %cst_16 : f32 to vector<1x256xf32>
    %32 = arith.subf %30, %31 : vector<1x256xf32>
    %33 = math.tanh %25 : vector<1x256xf32>
    %34 = arith.mulf %33, %33 : vector<1x256xf32>
    %cst_17 = arith.constant 1.000000e+00 : f32
    %35 = vector.broadcast %cst_17 : f32 to vector<1x256xf32>
    %36 = arith.subf %35, %34 : vector<1x256xf32>
    %cst_18 = arith.constant 1.000000e-07 : f32
    %37 = vector.broadcast %cst_18 : f32 to vector<1x256xf32>
    %38 = arith.addf %36, %37 : vector<1x256xf32>
    %39 = math.log %38 : vector<1x256xf32>
    %40 = arith.subf %32, %39 : vector<1x256xf32>
    %cst_19 = arith.constant 0.000000e+00 : f32
    %41 = vector.broadcast %cst_19 : f32 to vector<1x256xf32>
    %42 = arith.subf %41, %40 : vector<1x256xf32>
    %cst_20 = arith.constant 2.000000e+00 : f32
    %43 = vector.broadcast %cst_20 : f32 to vector<1x256xf32>
    %44 = arith.mulf %25, %43 : vector<1x256xf32>
    %c0_21 = arith.constant 0 : index
    %c0_22 = arith.constant 0 : index
    %45 = vector.load %arg7[%c0_21, %c0_22] : memref<2x256xf32, #tpu.memory_space<vmem>>, vector<1x256xf32>
    tpu.vector_store %arg7[%c0_21, %c0_22], %44 {strides = array<i32>} : memref<2x256xf32, #tpu.memory_space<vmem>>, vector<1x256xf32>,
    %c1 = arith.constant 1 : index
    %c0_23 = arith.constant 0 : index
    %46 = vector.load %arg7[%c1, %c0_23] : memref<2x256xf32, #tpu.memory_space<vmem>>, vector<1x256xf32>
    tpu.vector_store %arg7[%c1, %c0_23], %42 {strides = array<i32>} : memref<2x256xf32, #tpu.memory_space<vmem>>, vector<1x256xf32>,
    return
  }
  func.func @transform_0(%arg0: i32) -> (i32, i32) {
    %c0_i32 = arith.constant 0 : i32
    %c0_i32_0 = arith.constant 0 : i32
    return %c0_i32, %arg0 : i32, i32
  }
  func.func @transform_1(%arg0: i32) -> (i32, i32) {
    %c0_i32 = arith.constant 0 : i32
    %c0_i32_0 = arith.constant 0 : i32
    %c0_i32_1 = arith.constant 0 : i32
    return %c0_i32, %c0_i32_0 : i32, i32
  }
  func.func @transform_2(%arg0: i32) -> (i32, i32) {
    %c0_i32 = arith.constant 0 : i32
    %c0_i32_0 = arith.constant 0 : i32
    %c0_i32_1 = arith.constant 0 : i32
    return %c0_i32, %c0_i32_0 : i32, i32
  }
  func.func @transform_3(%arg0: i32) -> (i32, i32) {
    %c0_i32 = arith.constant 0 : i32
    %c0_i32_0 = arith.constant 0 : i32
    %c0_i32_1 = arith.constant 0 : i32
    return %c0_i32, %c0_i32_0 : i32, i32
  }
  func.func @transform_4(%arg0: i32) -> (i32, i32) {
    %c0_i32 = arith.constant 0 : i32
    %c0_i32_0 = arith.constant 0 : i32
    %c0_i32_1 = arith.constant 0 : i32
    return %c0_i32, %c0_i32_0 : i32, i32
  }
  func.func @transform_5(%arg0: i32) -> (i32, i32) {
    %c0_i32 = arith.constant 0 : i32
    %c0_i32_0 = arith.constant 0 : i32
    return %c0_i32, %arg0 : i32, i32
  }
  func.func @transform_6(%arg0: i32) -> (i32, i32) {
    %c0_i32 = arith.constant 0 : i32
    %c0_i32_0 = arith.constant 0 : i32
    return %c0_i32, %arg0 : i32, i32
  }
}

</mosaic_0001>

<bundles_post_ra>
// kernel: tpu_custom_call.1
= control target key start
LH: loop header
LB: loop body
LE: loop exit
PB: predicated region body
PF: predicated region fallthrough
CT: control target
= control target key end

     0   :  { %v597_v3 = vmov 0   ;;  %vm138_vm0 = vcmask 64512   ;;  %s836_s0 = inlined_call_operand.vmem [shape: f32[8,256], index: 0, kind: input, shape index: {}]   ;;  %s837_s1 = inlined_call_operand.vmem [shape: f32[128,8], index: 1, kind: input, shape index: {}]   ;;  %s838_s2 = inlined_call_operand.vmem [shape: f32[128,1], index: 2, kind: input, shape index: {}]   ;;  %s839_s3 = inlined_call_operand.vmem [shape: f32[8,128], index: 3, kind: input, shape index: {}]   ;;  %s840_s4 = inlined_call_operand.vmem [shape: f32[8,1], index: 4, kind: input, shape index: {}]   ;;  %s841_s5 = inlined_call_operand.vmem [shape: f32[1,256], index: 5, kind: input, shape index: {}]   ;;  %s842_s6 = inlined_call_operand.hbm [shape: f32[2,256], index: 6, kind: output, shape index: {}]  }
   0x1   :  { %v40_v0 = vld [vmem:[%s836_s0] sm:$0xff]  ;;  %v41_v1 = vld [vmem:[%s836_s0 + $0x8] sm:$0xff]  ;;  %v57_v2 = vld [vmem:[%s838_s2 + $0x78] sm:$0xff]  ;;  %544 = vset.pattern.permute.xlu0 %v597_v3  ;;  %545 = vset.pattern.permute.xlu1 %v597_v3 }
   0x2   :  { %202 = vmatpush.msra.mxu0 %v40_v0  ;;  %v24_v4 = vld [vmem:[%s837_s1] sm:$0xff]  ;;  %v34_v5 = vld [vmem:[%s837_s1 + $0x50] sm:$0xff]  ;;  %540 = vmatpush.msra.mxu2 %v40_v0  ;;  %v652_v6 = vld [vmem:[%s837_s1 + $0x48] sm:$0xff] }
   0x3   :  { %267 = vmatpush.msra.mxu1 %v41_v1  ;;  %541 = vmatpush.msra.mxu3 %v41_v1  ;;  %v55_v7 = vld [vmem:[%s838_s2 + $0x68] sm:$0xff]  ;;  %v53_v8 = vld [vmem:[%s838_s2 + $0x58] sm:$0xff]  ;;  %v56_v9 = vld [vmem:[%s838_s2 + $0x70] sm:$0xff] }
   0x4   :  { %135 = vperm.xlu0 %544, %v57_v2   ;;  %507 = vmatmul.msk.f32.vlgmr.msra.gmra.mxu0 %vm138_vm0, %v24_v4  ;;  %v25_v10 = vld [vmem:[%s837_s1 + $0x8] sm:$0xff]  ;;  %v35_v11 = vld [vmem:[%s837_s1 + $0x58] sm:$0xff] }
   0x5   :  { %517 = vmatmul.msk.f32.vlgmr.msra.gmra.mxu2 %vm138_vm0, %v34_v5  ;;  %523 = vmatmul.msk.f32.vlgmr.msra.gmra.mxu1 %vm138_vm0, %v24_v4 }
   0x6   :  { %532 = vmatmul.msk.f32.vlgmr.msra.gmra.mxu3 %vm138_vm0, %v652_v6  ;;  %546 = vset.pattern.permute.xlu2 %v597_v3 }
   0x7   :  { %125 = vperm.xlu1 %545, %v55_v7   ;;  %115 = vperm.xlu2 %546, %v53_v8  }
   0x8   :  { %11 = vsyncpa [#allocation3], 0  ;;  %v54_v12 = vld [vmem:[%s838_s2 + $0x60] sm:$0xff]  ;;  %v52_v13 = vld [vmem:[%s838_s2 + $0x50] sm:$0xff]  ;;  %vm472_vm5 = vcmask 1040384   ;;  %s498_s19 = sshll.u32 %s842_s6, 4  ;;  %s499_s19 = int_to_ptr.hbm [resolvable:$true] %s498_s19 }
   0x9   :  { %v51_v14 = vld [vmem:[%s838_s2 + $0x48] sm:$0xff]  ;;  %v26_v15 = vld [vmem:[%s837_s1 + $0x10] sm:$0xff]  ;;  %v36_v16 = vld [vmem:[%s837_s1 + $0x60] sm:$0xff] }
   0xa   :  { %v50_v17 = vld [vmem:[%s838_s2 + $0x40] sm:$0xff]  ;;  %v49_v18 = vld [vmem:[%s838_s2 + $0x38] sm:$0xff]  ;;  %v48_v19 = vld [vmem:[%s838_s2 + $0x30] sm:$0xff] }
   0xb   :  { %v27_v20 = vld [vmem:[%s837_s1 + $0x18] sm:$0xff]  ;;  %v37_v21 = vld [vmem:[%s837_s1 + $0x68] sm:$0xff]  ;;  %v46_v23 = vld [vmem:[%s838_s2 + $0x20] sm:$0xff] }
   0xc   :  { %130 = vperm.xlu0 %544, %v56_v9   ;;  %508 = vmatmul.msk.f32.gmra.mxu0 %vm138_vm0, %v25_v10  ;;  %v47_v22 = vld [vmem:[%s838_s2 + $0x28] sm:$0xff]  ;;  %v45_v24 = vld [vmem:[%s838_s2 + $0x18] sm:$0xff]  ;;  %v28_v25 = vld [vmem:[%s837_s1 + $0x20] sm:$0xff] }
   0xd   :  { %518 = vmatmul.msk.f32.gmra.mxu2 %vm138_vm0, %v35_v11  ;;  %524 = vmatmul.msk.f32.gmra.mxu1 %vm138_vm0, %v25_v10  ;;  %v38_v26 = vld [vmem:[%s837_s1 + $0x70] sm:$0xff]  ;;  %v43_v28 = vld [vmem:[%s838_s2 + $0x8] sm:$0xff]  ;;  %v42_v29 = vld [vmem:[%s838_s2] sm:$0xff] }
   0xe   :  { %533 = vmatmul.msk.f32.gmra.mxu3 %vm138_vm0, %v34_v5  ;;  %v44_v27 = vld [vmem:[%s838_s2 + $0x10] sm:$0xff]  ;;  %v29_v30 = vld [vmem:[%s837_s1 + $0x28] sm:$0xff]  ;;  %v39_v31 = vld [vmem:[%s837_s1 + $0x78] sm:$0xff] }
   0xf   :  { %120 = vperm.xlu1 %545, %v54_v12   ;;  %110 = vperm.xlu2 %546, %v52_v13   ;;  %v350_v32 = vld [vmem:[%s840_s4] sm:$0xff]  ;;  %v30_v33 = vld [vmem:[%s837_s1 + $0x30] sm:$0xff]  ;;  %v31_v34 = vld [vmem:[%s837_s1 + $0x38] sm:$0xff] }
  0x10   :  { %v32_v35 = vld [vmem:[%s837_s1 + $0x40] sm:$0xff] }
  0x14   :  { %105 = vperm.xlu0 %544, %v51_v14   ;;  %509 = vmatmul.msk.f32.gmra.mxu0 %vm138_vm0, %v26_v15 }
  0x15   :  { %519 = vmatmul.msk.f32.gmra.mxu2 %vm138_vm0, %v36_v16  ;;  %525 = vmatmul.msk.f32.gmra.mxu1 %vm138_vm0, %v26_v15 }
  0x16   :  { %534 = vmatmul.msk.f32.gmra.mxu3 %vm138_vm0, %v35_v11 }
  0x17   :  { %100 = vperm.xlu1 %545, %v50_v17   ;;  %95 = vperm.xlu2 %546, %v49_v18  }
  0x1c   :  { %90 = vperm.xlu0 %544, %v48_v19   ;;  %510 = vmatmul.msk.f32.gmra.mxu0 %vm138_vm0, %v27_v20 }
  0x1d   :  { %520 = vmatmul.msk.f32.gmra.mxu2 %vm138_vm0, %v37_v21  ;;  %526 = vmatmul.msk.f32.gmra.mxu1 %vm138_vm0, %v27_v20 }
  0x1e   :  { %535 = vmatmul.msk.f32.gmra.mxu3 %vm138_vm0, %v36_v16 }
  0x1f   :  { %85 = vperm.xlu1 %545, %v47_v22   ;;  %80 = vperm.xlu2 %546, %v46_v23  }
  0x24   :  { %75 = vperm.xlu0 %544, %v45_v24   ;;  %511 = vmatmul.msk.f32.gmra.mxu0 %vm138_vm0, %v28_v25 }
  0x25   :  { %521 = vmatmul.msk.f32.gmra.mxu2 %vm138_vm0, %v38_v26  ;;  %527 = vmatmul.msk.f32.gmra.mxu1 %vm138_vm0, %v28_v25 }
  0x26   :  { %536 = vmatmul.msk.f32.gmra.mxu3 %vm138_vm0, %v37_v21 }
  0x27   :  { %70 = vperm.xlu1 %545, %v44_v27   ;;  %65 = vperm.xlu2 %546, %v43_v28  }
  0x2c   :  { %60 = vperm.xlu0 %544, %v42_v29   ;;  %512 = vmatmul.msk.f32.gmra.mxu0 %vm138_vm0, %v29_v30 }
  0x2d   :  { %522 = vmatmul.msk.f32.gmra.mxu2 %vm138_vm0, %v39_v31  ;;  %528 = vmatmul.msk.f32.gmra.mxu1 %vm138_vm0, %v29_v30 }
  0x2e   :  { %537 = vmatmul.msk.f32.gmra.mxu3 %vm138_vm0, %v38_v26 }
  0x2f   :  { %353 = vperm.xlu1 %545, %v350_v32  }
  0x34   :  { %513 = vmatmul.msk.f32.gmra.mxu0 %vm138_vm0, %v30_v33 }
  0x35   :  { %529 = vmatmul.msk.f32.gmra.mxu1 %vm138_vm0, %v30_v33 }
  0x36   :  { %538 = vmatmul.msk.f32.gmra.mxu3 %vm138_vm0, %v39_v31 }
  0x3c   :  { %514 = vmatmul.msk.f32.gmra.mxu0 %vm138_vm0, %v31_v34 }
  0x3d   :  { %530 = vmatmul.msk.f32.gmra.mxu1 %vm138_vm0, %v31_v34 }
  0x44   :  { %515 = vmatmul.msk.f32.gmra.mxu0 %vm138_vm0, %v32_v35 }
  0x45   :  { %531 = vmatmul.msk.f32.gmra.mxu1 %vm138_vm0, %v32_v35 }
  0x4c   :  { %516 = vmatmul.msk.f32.gmra.mxu0 %vm138_vm0, %v652_v6 }
  0x61   :  { %v116_v58 = vpop.permute.xlu2 %115 }
  0x69   :  { %v111_v8 = vpop.permute.xlu2 %110 }
  0x71   :  { %v96_v27 = vpop.permute.xlu2 %95 }
  0x76   :  { %v136_v51 = vpop.permute.xlu0 %135 }
  0x79   :  { %v126_v56 = vpop.permute.xlu1 %125 }
  0x7e   :  { %v131_v60 = vpop.permute.xlu0 %130 }
  0x81   :  { %v775_v36 = vpop.f32.mrf.mxu0  ;;  %v121_v3 = vpop.permute.xlu1 %120 }
  0x82   :  { %v777_v37 = vpop.f32.mrf.mxu1 }
  0x86   :  { %v106_v9 = vpop.permute.xlu0 %105 }
  0x88   :  { %v234_v38 = vpop.f32.mrf.mxu2 }
  0x89   :  { %v779_v39 = vpop.f32.mrf.mxu3  ;;  %v781_v40 = vpop.f32.mrf.mxu0  ;;  %v235_v13 = vadd.f32 %v234_v38, %v111_v8 }
  0x8a   :  { %v783_v41 = vpop.f32.mrf.mxu1  ;;  %v101_v24 = vpop.permute.xlu1 %100  ;;  %v297_v35 = vadd.f32 %v779_v39, %v106_v9 }
  0x8b   :  { %v337_v23 = vmax.f32 %v235_v13, 0.0 }
  0x8e   :  { %v91_v28 = vpop.permute.xlu0 %90 }
  0x90   :  { %v237_v42 = vpop.f32.mrf.mxu2 }
  0x91   :  { %v299_v43 = vpop.f32.mrf.mxu3  ;;  %v785_v44 = vpop.f32.mrf.mxu0  ;;  %v238_v11 = vadd.f32 %v237_v42, %v116_v58 }
  0x92   :  { %v787_v45 = vpop.f32.mrf.mxu1  ;;  %v300_v31 = vadd.f32 %v299_v43, %v111_v8 }
  0x93   :  { %v339_v19 = vmax.f32 %v238_v11, 0.0 }
  0x94   :  { %v338_v42 = vmax.f32 %v300_v31, 0.0 }
  0x98   :  { %v240_v46 = vpop.f32.mrf.mxu2 }
  0x99   :  { %v302_v47 = vpop.f32.mrf.mxu3  ;;  %v789_v48 = vpop.f32.mrf.mxu0  ;;  %v241_v10 = vadd.f32 %v240_v46, %v121_v3 }
  0x9a   :  { %v791_v49 = vpop.f32.mrf.mxu1  ;;  %v303_v29 = vadd.f32 %v302_v47, %v116_v58  ;;  %v76_v47 = vpop.permute.xlu0 %75 }
  0x9b   :  { %v341_v14 = vmax.f32 %v241_v10, 0.0 }
  0x9c   :  { %v340_v38 = vmax.f32 %v303_v29, 0.0 }
  0xa0   :  { %v243_v50 = vpop.f32.mrf.mxu2 }
  0xa1   :  { %v305_v52 = vpop.f32.mrf.mxu3  ;;  %v793_v53 = vpop.f32.mrf.mxu0  ;;  %v244_v4 = vadd.f32 %v243_v50, %v126_v56 }
  0xa2   :  { %v795_v54 = vpop.f32.mrf.mxu1  ;;  %v306_v25 = vadd.f32 %v305_v52, %v121_v3  ;;  %v86_v50 = vpop.permute.xlu1 %85 }
  0xa3   :  { %v343_v12 = vmax.f32 %v244_v4, 0.0 }
  0xa4   :  { %v342_v32 = vmax.f32 %v306_v25, 0.0 }
  0xa8   :  { %v246_v55 = vpop.f32.mrf.mxu2 }
  0xa9   :  { %v308_v57 = vpop.f32.mrf.mxu3  ;;  %v797_v59 = vpop.f32.mrf.mxu0  ;;  %v247_v62 = vadd.f32 %v246_v55, %v131_v60 }
  0xaa   :  { %v799_v61 = vpop.f32.mrf.mxu1  ;;  %v309_v21 = vadd.f32 %v308_v57, %v126_v56  ;;  %v81_v55 = vpop.permute.xlu2 %80 }
  0xab   :  { %v345_v5 = vmax.f32 %v247_v62, 0.0  ;;  %v285_v62 = vadd.f32 %v799_v61, %v86_v50  ;;  %v71_v8 = vpop.permute.xlu1 %70  ;;  %v217_v13 = vadd.f32 %v793_v53, %v81_v55 }
  0xac   :  { %v344_v30 = vmax.f32 %v309_v21, 0.0  ;;  %v276_v10 = vadd.f32 %v787_v45, %v71_v8 }
  0xae   :  { %v322_v45 = vmax.f32 %v276_v10, 0.0 }
  0xb0   :  { %v249_v63 = vpop.f32.mrf.mxu2 }
  0xb1   :  { %v250_v0 = vadd.f32 %v249_v63, %v136_v51  ;;  %v311_v1 = vpop.f32.mrf.mxu3  ;;  %v801_v2 = vpop.f32.mrf.mxu0 }
  0xb2   :  { %v287_v7 = vpop.f32.mrf.mxu1  ;;  %v312_v16 = vadd.f32 %v311_v1, %v131_v60  ;;  %v282_v1 = vadd.f32 %v795_v54, %v81_v55  ;;  %v223_v4 = vadd.f32 %v801_v2, %v91_v28  ;;  %v66_v54 = vpop.permute.xlu2 %65 }
  0xb3   :  { %v347_v6 = vmax.f32 %v250_v0, 0.0  ;;  %v288_v56 = vadd.f32 %v287_v7, %v91_v28  ;;  %v328_v7 = vmax.f32 %v285_v62, 0.0  ;;  %v208_v53 = vadd.f32 %v781_v40, %v66_v54  ;;  %v354_v40 = vpop.permute.xlu1 %353 }
  0xb4   :  { %v346_v26 = vmax.f32 %v312_v16, 0.0  ;;  %v326_v11 = vmax.f32 %v282_v1, 0.0  ;;  %v329_v2 = vmax.f32 %v223_v4, 0.0 }
  0xb5   :  { %356 = vmatpush.msrb.mxu2 %v347_v6  ;;  %v330_v3 = vmax.f32 %v288_v56, 0.0  ;;  %v279_v6 = vadd.f32 %v791_v49, %v76_v47 }
  0xb7   :  { %357 = vmatpush.msrb.mxu2 %v345_v5  ;;  %v324_v49 = vmax.f32 %v279_v6, 0.0 }
  0xb9   :  { %v314_v15 = vpop.f32.mrf.mxu3  ;;  %358 = vmatpush.msrb.mxu2 %v343_v12  ;;  %v225_v18 = vpop.f32.mrf.mxu0 }
  0xba   :  { %v315_v17 = vadd.f32 %v314_v15, %v136_v51  ;;  %v290_v20 = vpop.f32.mrf.mxu1  ;;  %v336_v51 = vmax.f32 %v297_v35, 0.0  ;;  %v226_v63 = vadd.f32 %v225_v18, %v96_v27  ;;  %v61_v12 = vpop.permute.xlu0 %60  ;;  %v214_v15 = vadd.f32 %v789_v48, %v76_v47  ;;  %v349_v48 = vld [vmem:[%s839_s3] sm:$0xff] }
  0xbb   :  { %359 = vmatpush.msrb.mxu2 %v341_v14  ;;  %v291_v52 = vadd.f32 %v290_v20, %v96_v27  ;;  %v273_v14 = vadd.f32 %v783_v41, %v66_v54  ;;  %v325_v18 = vmax.f32 %v217_v13, 0.0 }
  0xbc   :  { %v348_v22 = vmax.f32 %v315_v17, 0.0  ;;  %v331_v61 = vmax.f32 %v226_v63, 0.0  ;;  %v211_v17 = vadd.f32 %v785_v44, %v71_v8  ;;  %v323_v20 = vmax.f32 %v214_v15, 0.0 }
  0xbd   :  { %360 = vmatpush.msrb.mxu2 %v339_v19  ;;  %v332_v39 = vmax.f32 %v291_v52, 0.0  ;;  %v320_v19 = vmax.f32 %v273_v14, 0.0  ;;  %v319_v44 = vmax.f32 %v208_v53, 0.0 }
  0xbe   :  { %376 = vmatpush.msrb.mxu3 %v348_v22  ;;  %v321_v21 = vmax.f32 %v211_v17, 0.0 }
  0xbf   :  { %361 = vmatpush.msrb.mxu2 %v337_v23 }
  0xc0   :  { %377 = vmatpush.msrb.mxu3 %v346_v26 }
  0xc1   :  { %v228_v33 = vpop.f32.mrf.mxu0 }
  0xc2   :  { %378 = vmatpush.msrb.mxu3 %v344_v30  ;;  %v293_v34 = vpop.f32.mrf.mxu1  ;;  %v229_v58 = vadd.f32 %v228_v33, %v101_v24 }
  0xc3   :  { %v294_v46 = vadd.f32 %v293_v34, %v101_v24 }
  0xc4   :  { %379 = vmatpush.msrb.mxu3 %v342_v32  ;;  %v333_v5 = vmax.f32 %v229_v58, 0.0 }
  0xc5   :  { %v334_v57 = vmax.f32 %v294_v46, 0.0 }
  0xc6   :  { %380 = vmatpush.msrb.mxu3 %v340_v38 }
  0xc8   :  { %381 = vmatpush.msrb.mxu3 %v338_v42  ;;  %v424_v42 = vld [vmem:[%s841_s5] sm:$0x3]  ;;  %s598_s5 = smov [#allocation2]  }
  0xc9   :  { %v231_v43 = vpop.f32.mrf.mxu0  ;;  %v427_v55 = vperm.slane %v424_v42, 1  ;;  %v426_v63 = vperm.slane %v424_v42, 0  ;;  %v442_v53 = vmul.f32 -0.5, %v424_v42  ;;  %s496_s16 = sshll.u32 %s598_s5, 4  ;;  %s497_s16 = int_to_ptr.vmem [resolvable:$true] %s496_s16 }
  0xca   :  { %382 = vmatpush.msrb.mxu3 %v336_v51  ;;  %v232_v60 = vadd.f32 %v231_v43, %v106_v9  ;;  %v220_v9 = vadd.f32 %v797_v59, %v86_v50  ;;  %v270_v59 = vadd.f32 %v777_v37, %v61_v12  ;;  %v205_v37 = vadd.f32 %v775_v36, %v61_v12 }
  0xcb   :  { %v484_v12 = vlaneseq }
  0xcc   :  { %383 = vmatpush.msrb.mxu3 %v334_v57  ;;  %v335_v0 = vmax.f32 %v232_v60, 0.0  ;;  %v327_v16 = vmax.f32 %v220_v9, 0.0  ;;  %v318_v41 = vmax.f32 %v270_v59, 0.0  ;;  %v317_v22 = vmax.f32 %v205_v37, 0.0 }
  0xcd   :  { %vm823_vm6 = vcmp.lt.s32.totalorder %v484_v12, 256 }
  0xce   :  { %384 = vmatpush.msrb.mxu3 %v332_v39  ;;  %362 = vmatpush.msrb.mxu2 %v335_v0 }
  0xd0   :  { %385 = vmatpush.msrb.mxu3 %v330_v3  ;;  %363 = vmatpush.msrb.mxu2 %v333_v5 }
  0xd2   :  { %386 = vmatpush.msrb.mxu3 %v328_v7  ;;  %364 = vmatpush.msrb.mxu2 %v331_v61 }
  0xd4   :  { %387 = vmatpush.msrb.mxu3 %v326_v11  ;;  %365 = vmatpush.msrb.mxu2 %v329_v2 }
  0xd6   :  { %388 = vmatpush.msrb.mxu3 %v324_v49  ;;  %366 = vmatpush.msrb.mxu2 %v327_v16 }
  0xd8   :  { %389 = vmatpush.msrb.mxu3 %v322_v45  ;;  %367 = vmatpush.msrb.mxu2 %v325_v18 }
  0xda   :  { %390 = vmatpush.msrb.mxu3 %v320_v19  ;;  %368 = vmatpush.msrb.mxu2 %v323_v20 }
  0xdc   :  { %391 = vmatpush.msrb.mxu3 %v318_v41  ;;  %369 = vmatpush.msrb.mxu2 %v321_v21 }
  0xdd   :  { %392 = vmatmul.f32.vlgmr.msrb.gmra.mxu3 %v349_v48 }
  0xde   :  { %370 = vmatpush.msrb.mxu2 %v319_v44 }
  0xe0   :  { %371 = vmatpush.msrb.mxu2 %v317_v22 }
  0xe1   :  { %372 = vmatmul.f32.vlgmr.msrb.gmra.mxu2 %v349_v48  ;;  %v443_v48 = vmul.f32 %v442_v53, %v424_v42 }
 0x160   :  { %v393_v23 = vpop.f32.mrf.mxu3 }
 0x161   :  { %v394_v24 = vadd.f32 %v393_v23, %v354_v40 }
 0x163   :  { %v399_v25 = vmin.f32 %v394_v24, 20.0  ;;  %vm397_vm2 = vcmp.gt.f32.partialorder %v394_v24, 20.0 }
 0x164   :  { %v373_v27 = vpop.f32.mrf.mxu2 }
 0x165   :  { %v402_v26 = vmul.f32 1.442695, %v399_v25  ;;  %v374_v28 = vadd.f32 %v373_v27, %v354_v40 }
 0x167   :  { %547 = vpow2.f32 %v402_v26  ;;  %v398_v29 = vmin.f32 %v374_v28, 20.0  ;;  %vm396_vm4 = vcmp.gt.f32.partialorder %v374_v28, 20.0 }
 0x169   :  { %v400_v36 = vmul.f32 1.442695, %v398_v29 }
 0x16b   :  { %549 = vpow2.f32 %v400_v36 }
 0x16d   :  { %v548_v30 = vpop.eup %547 }
 0x16e   :  { %v413_v31 = vadd.f32 1.0, %v548_v30  ;;  %v416_v32 = vmul.f32 -0.5, %v548_v30  ;;  %v419_v38 = vand.u32 2147483647, %v548_v30 }
 0x170   :  { %551 = vlog2.f32 %v413_v31  ;;  %v417_v34 = vadd.f32 1.0, %v416_v32  ;;  %vm420_vm1 = vcmp.lt.f32.partialorder %v419_v38, 0.0004427343 }
 0x171   :  { %v550_v33 = vpop.eup %549 }
 0x172   :  { %v404_v35 = vadd.f32 1.0, %v550_v33  ;;  %v407_v46 = vmul.f32 -0.5, %v550_v33  ;;  %v418_v52 = vmul.f32 %v548_v30, %v417_v34  ;;  %v410_v57 = vand.u32 2147483647, %v550_v33 }
 0x174   :  { %553 = vlog2.f32 %v404_v35  ;;  %v408_v47 = vadd.f32 1.0, %v407_v46  ;;  %vm411_vm3 = vcmp.lt.f32.partialorder %v410_v57, 0.0004427343 }
 0x176   :  { %v552_v50 = vpop.eup %551  ;;  %v409_v39 = vmul.f32 %v550_v33, %v408_v47 }
 0x177   :  { %v415_v51 = vmul.f32 0.6931472, %v552_v50 }
 0x179   :  { %v421_v56 = vsel %vm420_vm1, %v418_v52, %v415_v51 }
 0x17a   :  { %v423_v43 = vsel %vm397_vm2, %v394_v24, %v421_v56  ;;  %v554_v58 = vpop.eup %553 }
 0x17b   :  { %v431_v60 = vmul.f32 %v427_v55, %v423_v43  ;;  %555 = vlog2.f32 %v423_v43  ;;  %v406_v62 = vmul.f32 0.6931472, %v554_v58 }
 0x17d   :  { %v435_v0 = vrot.slane %v431_v60, 1  ;;  %v412_v1 = vsel %vm411_vm3, %v409_v39, %v406_v62 }
 0x17e   :  { %v422_v4 = vsel %vm396_vm4, %v374_v28, %v412_v1 }
 0x17f   :  { %v439_v3 = vadd.f32 %v435_v0, %v394_v24  ;;  %v430_v5 = vmul.f32 %v426_v63, %v422_v4  ;;  %557 = vlog2.f32 %v422_v4 }
 0x181   :  { %v556_v6 = vpop.eup %555  ;;  %559 = vtanh.f32 %v439_v3  ;;  %v434_v8 = vrot.slane %v430_v5, 1 }
 0x182   :  { %v447_v7 = vmul.f32 0.6931472, %v556_v6 }
 0x183   :  { %v438_v9 = vadd.f32 %v434_v8, %v374_v28 }
 0x184   :  { %451 = vst [vmem:[#allocation1 + $0x9] sm:$0xff] %v447_v7 }
 0x185   :  { %v558_v61 = vpop.eup %557  ;;  %561 = vtanh.f32 %v438_v9 }
 0x186   :  { %v445_v11 = vmul.f32 0.6931472, %v558_v61 }
 0x187   :  { %v560_v10 = vpop.eup %559 }
 0x188   :  { %563 = vtanh.f32 %v560_v10  ;;  %450 = vst [vmem:[#allocation1] sm:$0xff] %v445_v11  ;;  %v478_v54 = vmul.f32 2.0, %v560_v10 }
 0x18a   :  { %v481_v14 = vrot.slane %v478_v54, 7 }
 0x18b   :  { %v562_v13 = vpop.eup %561 }
 0x18c   :  { %565 = vtanh.f32 %v562_v13  ;;  %v477_v2 = vmul.f32 2.0, %v562_v13 }
 0x18e   :  { %v564_v15 = vpop.eup %563  ;;  %v482_v59 = vsel %vm472_vm5, %v477_v2, %v481_v14 }
 0x18f   :  { %v460_v16 = vmul.f32 %v564_v15, %v564_v15  ;;  %488 = vst.msk [vmem:[#allocation2] ss:$2 sm:$0x3] %vm823_vm6, %v482_v59  ;;  %v453_v21 = vld [vmem:[#allocation1 + $0x1] ss:$9 sm:$0xff] }
 0x190   :  { %v455_v22 = vsub.f32 %v443_v48, %v453_v21 }
 0x191   :  { %v462_v45 = vsub.f32 1.0, %v460_v16 }
 0x192   :  { %v566_v17 = vpop.eup %565  ;;  %v539_v25 = vadd.f32 -0.9189385, %v455_v22 }
 0x193   :  { %v464_v18 = vadd.f32 1e-07, %v462_v45  ;;  %v459_v19 = vmul.f32 %v566_v17, %v566_v17 }
 0x195   :  { %567 = vlog2.f32 %v464_v18  ;;  %v461_v20 = vsub.f32 1.0, %v459_v19 }
 0x197   :  { %v463_v41 = vadd.f32 1e-07, %v461_v20 }
 0x199   :  { %569 = vlog2.f32 %v463_v41 }
 0x19b   :  { %v568_v37 = vpop.eup %567 }
 0x19c   :  { %v468_v44 = vmul.f32 0.6931472, %v568_v37 }
 0x19e   :  { %v471_v24 = vrot.slane %v468_v44, 7 }
 0x19f   :  { %v570_v40 = vpop.eup %569 }
 0x1a0   :  { %v466_v23 = vmul.f32 0.6931472, %v570_v40 }
 0x1a2   :  { %v473_v26 = vsel %vm472_vm5, %v466_v23, %v471_v24 }
 0x1a3   :  { %v475_v27 = vsub.f32 %v539_v25, %v473_v26 }
 0x1a5   :  { %v476_v28 = vsub.f32 0.0, %v475_v27 }
 0x1a7   :  { %490 = vst.msk [vmem:[#allocation2 + $0x1] ss:$2 sm:$0x3] %vm823_vm6, %v476_v28 }
 0x1a8   :  { %501 = dma.vmem_to_hbm [thread:$0]  %s497_s16, 64, %s499_s19, [#allocation3]  }
 0x1a9   :  { %595 = dma.done.wait [#allocation3], 64  }
 0x1aa   :  { %596 = vsyncadd [#allocation3], 4294967232 }
 0x1ab   :  { %506 = vsyncpa [#allocation3], 1 }

</bundles_post_ra>
